<compile_context>
chip_gen: v7x
topology: tpu7x:2x2x1
jax: 0.10.0
libtpu: 0.0.40
codegen_flags: <defaults>
</compile_context>

<pallas_src>
import jax
import jax.numpy as jnp
from jax.experimental import pallas as pl
from jax.experimental.pallas import tpu as pltpu


def _round_up(x, m):
    return ((x + m - 1) // m) * m


def toynet_kernel(x_ref, wc_ref, bc_ref, wf_ref, bf_ref, out_ref):
    # x_ref : (TN, 27)   VMEM  flattened NCHW input tile (pipelined over grid)
    # wc_ref: (3, 27)    VMEM  conv weight rows (resident across grid)
    # bc_ref: (3,)       SMEM  conv bias (scalar reads)
    # wf_ref: (3, Cp)    VMEM  fc weight rows, Cp = num_classes padded to 128 (resident)
    # bf_ref: (1, Cp)    VMEM  fc bias (resident)
    # out_ref: (TN, Cp)  VMEM  lane-dense output tile
    x = x_ref[...]

    # 27 -> 3 projection on VPU (mul) + XLU (lane reduce), bias + ReLU per channel.
    # Accumulation is f32 regardless of out_ref dtype.
    h0 = jnp.maximum(
        jnp.sum(x * wc_ref[0:1, :], axis=-1, keepdims=True) + bc_ref[0], 0.0)
    h1 = jnp.maximum(
        jnp.sum(x * wc_ref[1:2, :], axis=-1, keepdims=True) + bc_ref[1], 0.0)
    h2 = jnp.maximum(
        jnp.sum(x * wc_ref[2:3, :], axis=-1, keepdims=True) + bc_ref[2], 0.0)

    # 3 -> Cp linear layer as 3 broadcast FMAs over the lane-dense output tile
    # (avoids the K=3 MXU push/pop round trip entirely).  f32 accumulate,
    # downcast only at the store (bf16 store halves writeback where allowed).
    out = (bf_ref[...]
           + h0 * wf_ref[0:1, :]
           + h1 * wf_ref[1:2, :]
           + h2 * wf_ref[2:3, :])
    out_ref[...] = out.astype(out_ref.dtype)


def toynet_forward(x_nchw, conv_w, conv_b, fc_w, fc_b, *, tn=2048,
                   out_dtype=jnp.float32, return_padded=False):
    """ToyNet forward.

    x_nchw: (N,3,3,3) f32; conv_w: (3,3,3,3); conv_b: (3,);
    fc_w: (num_classes,3); fc_b: (num_classes,).

    return_padded=False -> (N, num_classes), exact PyTorch semantics.
    return_padded=True  -> (n_pad, c_pad) lane-dense logits with no post-kernel
      copy; classes >= num_classes are exactly 0, rows >= N are padding
      garbage. Preferred for hot-path consumers (the column slice otherwise
      re-reads/re-writes ~N*num_classes*4 B of HBM).
    """
    N = x_nchw.shape[0]
    num_classes = fc_w.shape[0]
    K = 3 * 3 * 3  # 27 flattened conv input features

    # Layout glue (plain JAX).
    x_flat = x_nchw.reshape(N, K).astype(jnp.float32)      # (N, 27)
    wc = conv_w.reshape(3, K).astype(jnp.float32)           # (3, 27) rows
    bc = conv_b.astype(jnp.float32)                         # (3,)  -> SMEM
    wf = fc_w.T.astype(jnp.float32)                         # (3, C)
    bf = fc_b.reshape(1, num_classes).astype(jnp.float32)   # (1, C)

    # Lane-dense output: pad classes to a multiple of 128 (full vst, not vst.msk).
    c_pad = _round_up(num_classes, 128)
    if c_pad != num_classes:
        wf = jnp.pad(wf, ((0, 0), (0, c_pad - num_classes)))
        bf = jnp.pad(bf, ((0, 0), (0, c_pad - num_classes)))

    # --- VMEM budget (generation-safe) -------------------------------------
    # Per-row VMEM: double-buffered output tile + double-buffered input tile.
    out_itemsize = jnp.dtype(out_dtype).itemsize
    bytes_per_row = 2 * c_pad * out_itemsize + 2 * K * 4
    vmem_budget = 26 * 1024 * 1024        # <= v7x 32 MiB scoped / 64 MiB physical
    tn_cap = max(8, (vmem_budget // bytes_per_row) // 8 * 8)
    tn_eff = max(8, min(tn, tn_cap, _round_up(N, 8)))

    n_pad = _round_up(N, tn_eff)
    if n_pad != N:
        x_flat = jnp.pad(x_flat, ((0, n_pad - N), (0, 0)))
    grid = (n_pad // tn_eff,)

    # Explicit scoped-VMEM limit: raises v5e's 16 MiB default when the tile
    # needs it, stays well under every generation's physical VMEM.
    resident_bytes = 2 * (3 * K * 4) + 2 * (3 * c_pad * 4) + 2 * (1 * c_pad * 4)
    vmem_needed = tn_eff * bytes_per_row + resident_bytes
    vmem_limit = int(min(max(vmem_needed + (2 << 20), 16 << 20), 30 << 20))

    out = pl.pallas_call(
        toynet_kernel,
        out_shape=jax.ShapeDtypeStruct((n_pad, c_pad), out_dtype),
        grid=grid,
        in_specs=[
            pl.BlockSpec((tn_eff, K), lambda i: (i, 0)),        # x tile, pipelined
            pl.BlockSpec((3, K), lambda i: (0, 0)),             # conv W, resident
            pl.BlockSpec(memory_space=pltpu.MemorySpace.SMEM),  # conv bias scalars
            pl.BlockSpec((3, c_pad), lambda i: (0, 0)),         # fc W, resident
            pl.BlockSpec((1, c_pad), lambda i: (0, 0)),         # fc bias, resident
        ],
        out_specs=pl.BlockSpec((tn_eff, c_pad), lambda i: (i, 0)),
        compiler_params=pltpu.CompilerParams(
            # TODO(synk): consider pltpu.CORE_PARALLEL here on v7x after
            # verifying plain "parallel" does not split the grid across TCs.
            dimension_semantics=("parallel",),
            vmem_limit_bytes=vmem_limit,
        ),
    )(x_flat, wc, bc, wf, bf)

    if return_padded:
        return out

    # Exact-semantics path: slice only what is actually padded.
    if n_pad != N:
        out = out[:N]
    if c_pad != num_classes:
        out = out[:, :num_classes]
    return out


def init_params(key, num_classes):
    """Deterministic init mimicking PyTorch default (uniform +-1/sqrt(fan_in))."""
    k1, k2, k3, k4 = jax.random.split(key, 4)
    fan_conv = 3 * 3 * 3
    bound_c = 1.0 / jnp.sqrt(fan_conv)
    conv_w = jax.random.uniform(k1, (3, 3, 3, 3), jnp.float32, -bound_c, bound_c)
    conv_b = jax.random.uniform(k2, (3,), jnp.float32, -bound_c, bound_c)
    fan_fc = 3
    bound_f = 1.0 / jnp.sqrt(fan_fc)
    fc_w = jax.random.uniform(k3, (num_classes, 3), jnp.float32, -bound_f, bound_f)
    fc_b = jax.random.uniform(k4, (num_classes,), jnp.float32, -bound_f, bound_f)
    return conv_w, conv_b, fc_w, fc_b


if __name__ == "__main__":
    key = jax.random.PRNGKey(0)
    kx, kp = jax.random.split(key)

    # NOTE: at N=8 this call is a single ~32 KiB output step dominated by
    # launch overhead; the kernel only pays off for N in the thousands (or by
    # batching multiple forwards per call).  Small demo size per the spec.
    N = 8
    NUM_CLASSES = 1000  # module default; wrapper pads to 1024 lanes

    # Input must be (N, 3, 3, 3) so the 3x3 valid conv yields 1x1 spatial,
    # matching x.view(x.size(0), 3) in the PyTorch forward.
    x = jax.random.normal(kx, (N, 3, 3, 3), dtype=jnp.float32)
    conv_w, conv_b, fc_w, fc_b = init_params(kp, NUM_CLASSES)

    # Pure-JAX reference.
    x_flat = x.reshape(N, 27)
    h = jnp.maximum(x_flat @ conv_w.reshape(3, 27).T + conv_b, 0.0)
    ref = h @ fc_w.T + fc_b

    # 1) Exact-semantics path (matches the PyTorch module output shape).
    out = jax.block_until_ready(toynet_forward(x, conv_w, conv_b, fc_w, fc_b))
    assert out.shape == (N, NUM_CLASSES)
    assert jnp.allclose(out, ref, atol=1e-5, rtol=1e-5)

    # 2) Padded fast path: no post-kernel slice copy (preferred in hot loops).
    out_pad = jax.block_until_ready(
        toynet_forward(x, conv_w, conv_b, fc_w, fc_b, return_padded=True))
    assert out_pad.shape[1] % 128 == 0
    assert jnp.allclose(out_pad[:N, :NUM_CLASSES], ref, atol=1e-5, rtol=1e-5)
    assert jnp.all(out_pad[:N, NUM_CLASSES:] == 0.0)  # padded classes are exact zeros

    # 3) bf16-store path (f32 accumulation, downcast at store): halves writeback.
    out_bf16 = jax.block_until_ready(
        toynet_forward(x, conv_w, conv_b, fc_w, fc_b,
                       out_dtype=jnp.bfloat16, return_padded=True))
    assert jnp.allclose(out_bf16[:N, :NUM_CLASSES].astype(jnp.float32), ref,
                        atol=5e-2, rtol=5e-2)

    print("KERNEL_OK")
</pallas_src>

<mosaic_0001>
module attributes {stable_mosaic.version = 11 : i64} {
  func.func @toynet_kernel(%arg0: i32, %arg1: memref<8x27xf32, #tpu.memory_space<vmem>>, %arg2: memref<3x27xf32, #tpu.memory_space<vmem>>, %arg3: memref<3xf32, #tpu.memory_space<smem>>, %arg4: memref<3x1024xf32, #tpu.memory_space<vmem>>, %arg5: memref<1x1024xf32, #tpu.memory_space<vmem>>, %arg6: memref<8x1024xf32, #tpu.memory_space<vmem>>) attributes {dimension_semantics = [#tpu.dimension_semantics<parallel>], iteration_bounds = array<i64: 1>, scalar_prefetch = 0 : i64, scratch_operands = 0 : i64, tpu.core_type = #tpu.core_type<tc>, window_params = [{transform_indices = @transform_0, window_bounds = array<i64: 8, 27>}, {pipeline_mode = #tpu.pipeline_mode<synchronous>, transform_indices = @transform_1, window_bounds = array<i64: 3, 27>}, {transform_indices = @transform_2, window_bounds = array<i64: 3>}, {pipeline_mode = #tpu.pipeline_mode<synchronous>, transform_indices = @transform_3, window_bounds = array<i64: 3, 1024>}, {pipeline_mode = #tpu.pipeline_mode<synchronous>, transform_indices = @transform_4, window_bounds = array<i64: 1, 1024>}, {transform_indices = @transform_5, window_bounds = array<i64: 8, 1024>}]} {
    %c0 = arith.constant 0 : index
    %c0_0 = arith.constant 0 : index
    %0 = vector.load %arg1[%c0, %c0_0] : memref<8x27xf32, #tpu.memory_space<vmem>>, vector<8x27xf32>
    %c0_1 = arith.constant 0 : index
    %c0_2 = arith.constant 0 : index
    %1 = vector.load %arg2[%c0_1, %c0_2] : memref<3x27xf32, #tpu.memory_space<vmem>>, vector<1x27xf32>
    %2 = vector.broadcast %1 : vector<1x27xf32> to vector<8x27xf32>
    %3 = arith.mulf %0, %2 : vector<8x27xf32>
    %cst = arith.constant dense<0.000000e+00> : vector<8xf32>
    %4 = vector.multi_reduction <add>, %3, %cst [1] : vector<8x27xf32> to vector<8xf32>
    %5 = vector.shape_cast %4 : vector<8xf32> to vector<8x1xf32>
    %c0_3 = arith.constant 0 : index
    %6 = memref.load %arg3[%c0_3] : memref<3xf32, #tpu.memory_space<smem>>
    %7 = vector.broadcast %6 : f32 to vector<8x1xf32>
    %8 = arith.addf %5, %7 : vector<8x1xf32>
    %cst_4 = arith.constant 0.000000e+00 : f32
    %9 = vector.broadcast %cst_4 : f32 to vector<8x1xf32>
    %10 = arith.maximumf %8, %9 : vector<8x1xf32>
    %c1 = arith.constant 1 : index
    %c0_5 = arith.constant 0 : index
    %11 = vector.load %arg2[%c1, %c0_5] : memref<3x27xf32, #tpu.memory_space<vmem>>, vector<1x27xf32>
    %12 = vector.broadcast %11 : vector<1x27xf32> to vector<8x27xf32>
    %13 = arith.mulf %0, %12 : vector<8x27xf32>
    %cst_6 = arith.constant dense<0.000000e+00> : vector<8xf32>
    %14 = vector.multi_reduction <add>, %13, %cst_6 [1] : vector<8x27xf32> to vector<8xf32>
    %15 = vector.shape_cast %14 : vector<8xf32> to vector<8x1xf32>
    %c1_7 = arith.constant 1 : index
    %16 = memref.load %arg3[%c1_7] : memref<3xf32, #tpu.memory_space<smem>>
    %17 = vector.broadcast %16 : f32 to vector<8x1xf32>
    %18 = arith.addf %15, %17 : vector<8x1xf32>
    %cst_8 = arith.constant 0.000000e+00 : f32
    %19 = vector.broadcast %cst_8 : f32 to vector<8x1xf32>
    %20 = arith.maximumf %18, %19 : vector<8x1xf32>
    %c2 = arith.constant 2 : index
    %c0_9 = arith.constant 0 : index
    %21 = vector.load %arg2[%c2, %c0_9] : memref<3x27xf32, #tpu.memory_space<vmem>>, vector<1x27xf32>
    %22 = vector.broadcast %21 : vector<1x27xf32> to vector<8x27xf32>
    %23 = arith.mulf %0, %22 : vector<8x27xf32>
    %cst_10 = arith.constant dense<0.000000e+00> : vector<8xf32>
    %24 = vector.multi_reduction <add>, %23, %cst_10 [1] : vector<8x27xf32> to vector<8xf32>
    %25 = vector.shape_cast %24 : vector<8xf32> to vector<8x1xf32>
    %c2_11 = arith.constant 2 : index
    %26 = memref.load %arg3[%c2_11] : memref<3xf32, #tpu.memory_space<smem>>
    %27 = vector.broadcast %26 : f32 to vector<8x1xf32>
    %28 = arith.addf %25, %27 : vector<8x1xf32>
    %cst_12 = arith.constant 0.000000e+00 : f32
    %29 = vector.broadcast %cst_12 : f32 to vector<8x1xf32>
    %30 = arith.maximumf %28, %29 : vector<8x1xf32>
    %c0_13 = arith.constant 0 : index
    %c0_14 = arith.constant 0 : index
    %31 = vector.load %arg5[%c0_13, %c0_14] : memref<1x1024xf32, #tpu.memory_space<vmem>>, vector<1x1024xf32>
    %c0_15 = arith.constant 0 : index
    %c0_16 = arith.constant 0 : index
    %32 = vector.load %arg4[%c0_15, %c0_16] : memref<3x1024xf32, #tpu.memory_space<vmem>>, vector<1x1024xf32>
    %33 = vector.broadcast %10 : vector<8x1xf32> to vector<8x1024xf32>
    %34 = vector.broadcast %32 : vector<1x1024xf32> to vector<8x1024xf32>
    %35 = arith.mulf %33, %34 : vector<8x1024xf32>
    %36 = vector.broadcast %31 : vector<1x1024xf32> to vector<8x1024xf32>
    %37 = arith.addf %36, %35 : vector<8x1024xf32>
    %c1_17 = arith.constant 1 : index
    %c0_18 = arith.constant 0 : index
    %38 = vector.load %arg4[%c1_17, %c0_18] : memref<3x1024xf32, #tpu.memory_space<vmem>>, vector<1x1024xf32>
    %39 = vector.broadcast %20 : vector<8x1xf32> to vector<8x1024xf32>
    %40 = vector.broadcast %38 : vector<1x1024xf32> to vector<8x1024xf32>
    %41 = arith.mulf %39, %40 : vector<8x1024xf32>
    %42 = arith.addf %37, %41 : vector<8x1024xf32>
    %c2_19 = arith.constant 2 : index
    %c0_20 = arith.constant 0 : index
    %43 = vector.load %arg4[%c2_19, %c0_20] : memref<3x1024xf32, #tpu.memory_space<vmem>>, vector<1x1024xf32>
    %44 = vector.broadcast %30 : vector<8x1xf32> to vector<8x1024xf32>
    %45 = vector.broadcast %43 : vector<1x1024xf32> to vector<8x1024xf32>
    %46 = arith.mulf %44, %45 : vector<8x1024xf32>
    %47 = arith.addf %42, %46 : vector<8x1024xf32>
    %c0_21 = arith.constant 0 : index
    %c0_22 = arith.constant 0 : index
    %48 = vector.load %arg6[%c0_21, %c0_22] : memref<8x1024xf32, #tpu.memory_space<vmem>>, vector<8x1024xf32>
    tpu.vector_store %arg6[%c0_21, %c0_22], %47 {strides = array<i32>} : memref<8x1024xf32, #tpu.memory_space<vmem>>, vector<8x1024xf32>,
    return
  }
  func.func @transform_0(%arg0: i32) -> (i32, i32) {
    %c0_i32 = arith.constant 0 : i32
    %c0_i32_0 = arith.constant 0 : i32
    return %arg0, %c0_i32 : i32, i32
  }
  func.func @transform_1(%arg0: i32) -> (i32, i32) {
    %c0_i32 = arith.constant 0 : i32
    %c0_i32_0 = arith.constant 0 : i32
    %c0_i32_1 = arith.constant 0 : i32
    return %c0_i32, %c0_i32_0 : i32, i32
  }
  func.func @transform_2(%arg0: i32) -> i32 {
    %c0_i32 = arith.constant 0 : i32
    %c0_i32_0 = arith.constant 0 : i32
    return %c0_i32 : i32
  }
  func.func @transform_3(%arg0: i32) -> (i32, i32) {
    %c0_i32 = arith.constant 0 : i32
    %c0_i32_0 = arith.constant 0 : i32
    %c0_i32_1 = arith.constant 0 : i32
    return %c0_i32, %c0_i32_0 : i32, i32
  }
  func.func @transform_4(%arg0: i32) -> (i32, i32) {
    %c0_i32 = arith.constant 0 : i32
    %c0_i32_0 = arith.constant 0 : i32
    %c0_i32_1 = arith.constant 0 : i32
    return %c0_i32, %c0_i32_0 : i32, i32
  }
  func.func @transform_5(%arg0: i32) -> (i32, i32) {
    %c0_i32 = arith.constant 0 : i32
    %c0_i32_0 = arith.constant 0 : i32
    return %arg0, %c0_i32 : i32, i32
  }
}

</mosaic_0001>

<bundles_post_ra>
// kernel: tpu_custom_call.1
= control target key start
LH: loop header
LB: loop body
LE: loop exit
PB: predicated region body
PF: predicated region fallthrough
CT: control target
= control target key end

     0   :  { %10 = vsyncpa [#allocation3], 0  ;;  %s629_s0 = inlined_call_operand.hbm [shape: f32[8,27], index: 0, kind: input, shape index: {}]   ;;  %s630_s1 = inlined_call_operand.hbm [shape: f32[3,27], index: 1, kind: input, shape index: {}]   ;;  %s631_s2 = inlined_call_operand.vmem [shape: f32[3], index: 2, kind: input, shape index: {}]   ;;  %s632_s3 = inlined_call_operand.hbm [shape: f32[3,1024], index: 3, kind: input, shape index: {}]   ;;  %s633_s4 = inlined_call_operand.vmem [shape: f32[1,1024], index: 4, kind: input, shape index: {}]   ;;  %s634_s5 = inlined_call_operand.hbm [shape: f32[8,1024], index: 5, kind: output, shape index: {}]  }
   0x1   :  { %11 = vsyncpa [#allocation7], 0 }
   0x2   :  { %12 = vsyncpa [#allocation5], 0 }
   0x3   :  { %13 = vsyncpa [#allocation4], 0  ;;  %s473_s18 = smov [#allocation6]   ;;  %s474_s20 = smov [#allocation2]  }
   0x4   :  { %s30_s19 = sshll.u32 %s473_s18, 4  ;;  %s20_s21 = sshll.u32 %s474_s20, 4  ;;  %s31_s19 = int_to_ptr.vmem [resolvable:$true] %s30_s19  ;;  %s21_s21 = int_to_ptr.vmem [resolvable:$true] %s20_s21 }
   0x5   :  { %s363_s24 = scalar_lea.hbm %s630_s1, 64 }
   0x6   :  { %p364_p0 = scmp.ne.s32.totalorder %s630_s1, %s363_s24  ;;  %p367_p1 = scmp.lt.u32.totalorder %s363_s24, %s630_s1 }
   0x8   :  { %p369_p2 = pnand %p367_p1, %p364_p0 }
   0xa   :  { %372 = shalt.err (!%p369_p2)
}
   0xb   :  { %s373_s29 = scalar_lea.vmem %s31_s19, 64  ;;  %p378_p4 = scmp.lt.s32.totalorder %s31_s19, %s31_s19 }
   0xc   :  { %p374_p3 = scmp.ne.s32.totalorder %s31_s19, %s373_s29  ;;  %p379_p5 = scmp.lt.s32.totalorder %s373_s29, %s373_s29 }
   0xe   :  { %p380_p6 = por %p379_p5, %p378_p4 }
  0x10   :  { %p381_p7 = pnand %p380_p6, %p374_p3 }
  0x12   :  { %384 = shalt.err (!%p381_p7)
}
  0x13   :  { %33 = dma.hbm_to_vmem [thread:$0]  %s630_s1, 64, %s31_s19, [#allocation7]  }
  0x14   :  { %s385_s9 = scalar_lea.hbm %s629_s0, 128 }
  0x15   :  { %p386_p8 = scmp.ne.s32.totalorder %s629_s0, %s385_s9  ;;  %p389_p9 = scmp.lt.u32.totalorder %s385_s9, %s629_s0 }
  0x17   :  { %p391_p10 = pnand %p389_p9, %p386_p8 }
  0x19   :  { %394 = shalt.err (!%p391_p10)
}
  0x1a   :  { %s395_s14 = scalar_lea.vmem %s21_s21, 128  ;;  %p400_p12 = scmp.lt.s32.totalorder %s21_s21, %s21_s21 }
  0x1b   :  { %p396_p11 = scmp.ne.s32.totalorder %s21_s21, %s395_s14  ;;  %p401_p13 = scmp.lt.s32.totalorder %s395_s14, %s395_s14 }
  0x1d   :  { %p402_p0 = por %p401_p13, %p400_p12 }
  0x1f   :  { %p403_p1 = pnand %p402_p0, %p396_p11 }
  0x21   :  { %406 = shalt.err (!%p403_p1)
}
  0x22   :  { %23 = dma.hbm_to_vmem [thread:$0]  %s629_s0, 128, %s21_s21, [#allocation3]  }
  0x23   :  { %s40_s18 = sshll.u32 %s631_s2, 4  ;;  %s41_s18 = int_to_ptr.vmem [resolvable:$true] %s40_s18 }
  0x24   :  { %s407_s19 = scalar_lea.vmem %s41_s18, 16  ;;  %p412_p3 = scmp.lt.s32.totalorder %s41_s18, %s41_s18 }
  0x25   :  { %p408_p2 = scmp.ne.s32.totalorder %s41_s18, %s407_s19  ;;  %p413_p4 = scmp.lt.s32.totalorder %s407_s19, %s407_s19 }
  0x27   :  { %p414_p5 = por %p413_p4, %p412_p3 }
  0x29   :  { %p415_p6 = pnand %p414_p5, %p408_p2 }
  0x2b   :  { %418 = shalt.err (!%p415_p6)
}
  0x2c   :  { %s475_s20 = smov [#allocation8]   ;;  %s476_s22 = smov [#allocation9]  }
  0x2d   :  { %43 = dma.vmem_to_smem %s41_s18, 16, %s475_s20, [#allocation5]  }
  0x2e   :  { %s50_s23 = sshll.u32 %s476_s22, 4  ;;  %s419_s0 = scalar_lea.hbm %s632_s3, 512  ;;  %s51_s23 = int_to_ptr.vmem [resolvable:$true] %s50_s23 }
  0x2f   :  { %p420_p7 = scmp.ne.s32.totalorder %s632_s3, %s419_s0  ;;  %p423_p8 = scmp.lt.u32.totalorder %s419_s0, %s632_s3 }
  0x31   :  { %p425_p9 = pnand %p423_p8, %p420_p7 }
  0x33   :  { %428 = shalt.err (!%p425_p9)
}
  0x34   :  { %s429_s28 = scalar_lea.vmem %s51_s23, 512  ;;  %p434_p11 = scmp.lt.s32.totalorder %s51_s23, %s51_s23 }
  0x35   :  { %p430_p10 = scmp.ne.s32.totalorder %s51_s23, %s429_s28  ;;  %p435_p12 = scmp.lt.s32.totalorder %s429_s28, %s429_s28 }
  0x37   :  { %p436_p13 = por %p435_p12, %p434_p11 }
  0x39   :  { %p437_p0 = pnand %p436_p13, %p430_p10 }
  0x3b   :  { %440 = shalt.err (!%p437_p0)
}
  0x3c   :  { %53 = dma.hbm_to_vmem [thread:$0]  %s632_s3, 512, %s51_s23, [#allocation7]  }
  0x3d   :  { %463 = dma.done.wait [#allocation3], 128  }
  0x3e   :  { %464 = vsyncadd [#allocation3], 4294967168 }
  0x3f   :  { %465 = dma.done.wait [#allocation7], 64  }
  0x40   :  { %466 = vsyncadd [#allocation7], 4294967232 }
  0x41   :  { %467 = dma.done.wait [#allocation5], 16  }
  0x42   :  { %468 = vsyncadd [#allocation5], 4294967280 }
  0x43   :  { %469 = dma.done.wait [#allocation7], 512  }
  0x44   :  { %470 = vsyncadd [#allocation7], 4294966784 }
  0x45   :  { %68 = sfence }
  0x46   :  { %v69_v0 = vld [vmem:[#allocation2] sm:$0xff]  ;;  %v353_v1 = vld [vmem:[#allocation6] ss:$0 sm:$0xff]  ;;  %vm76_vm0 = vcmask 220160   ;;  %v354_v2 = vld [vmem:[#allocation6 + $0x1] ss:$0 sm:$0xff]  ;;  %v113_v10 = vlaneseq }
  0x47   :  { %v75_v3 = vmul.f32 %v353_v1, %v69_v0  ;;  %v89_v4 = vmul.f32 %v354_v2, %v69_v0  ;;  %v356_v5 = vld [vmem:[#allocation6 + $0x2] ss:$0 sm:$0xff]  ;;  %s547_s3 = sld [smem:[#allocation8]]  ;;  %s549_s6 = sld [smem:[#allocation8 + $0x1]]  ;;  %v111_v14 = vld [vmem:[#allocation9] ss:$4 sm:$0xff] }
  0x48   :  { %v102_v6 = vmul.f32 %v356_v5, %v69_v0  ;;  %v114_v11 = vshrl.u32 %v113_v10, 7  ;;  %s551_s7 = sld [smem:[#allocation8 + $0x2]]  ;;  %v110_v22 = vld [vmem:[%s633_s4] sm:$0xff]  ;;  %s477_s4 = smov [#allocation10]  }
  0x49   :  { %v77_v7 = vsel %vm76_vm0, %v75_v3, 0.0  ;;  %v90_v9 = vsel %vm76_vm0, %v89_v4, 0.0  ;;  %v211_v33 = vld [vmem:[#allocation9 + $0x1] ss:$4 sm:$0xff]  ;;  %v591_v42 = vld [vmem:[#allocation9 + $0x2] ss:$4 sm:$0xff] }
  0x4a   :  { %78 = vadd.xlane.f32.xlu0 %v77_v7  ;;  %v103_v8 = vsel %vm76_vm0, %v102_v6, 0.0  ;;  %v553_v12 = vsub.s32 0, %v114_v11  ;;  %v555_v13 = vsub.s32 1, %v114_v11  ;;  %v557_v15 = vsub.s32 2, %v114_v11  ;;  %s342_s10 = sshll.u32 %s477_s4, 4  ;;  %s343_s10 = int_to_ptr.vmem [resolvable:$true] %s342_s10 }
  0x4b   :  { %104 = vadd.xlane.f32.xlu1 %v103_v8  ;;  %v559_v16 = vsub.s32 3, %v114_v11  ;;  %v561_v17 = vsub.s32 4, %v114_v11  ;;  %v563_v18 = vsub.s32 5, %v114_v11  ;;  %v565_v19 = vsub.s32 6, %v114_v11  ;;  %s441_s11 = scalar_lea.vmem %s343_s10, 1024  ;;  %p446_p2 = scmp.lt.s32.totalorder %s343_s10, %s343_s10 }
  0x4c   :  { %v567_v20 = vsub.s32 7, %v114_v11  ;;  %v116_v23 = vrot.slane %v111_v14, %v553_v12  ;;  %v120_v24 = vrot.slane %v111_v14, %v555_v13  ;;  %v124_v26 = vrot.slane %v111_v14, %v557_v15  ;;  %p442_p1 = scmp.ne.s32.totalorder %s343_s10, %s441_s11  ;;  %p447_p3 = scmp.lt.s32.totalorder %s441_s11, %s441_s11 }
  0x4d   :  { %v81_v21 = vstv %s547_s3  ;;  %v94_v25 = vstv %s549_s6  ;;  %v128_v27 = vrot.slane %v111_v14, %v559_v16  ;;  %v132_v28 = vrot.slane %v111_v14, %v561_v17 }
  0x4e   :  { %91 = vadd.xlane.f32.xlu0 %v90_v9  ;;  %v107_v29 = vstv %s551_s7  ;;  %v136_v30 = vrot.slane %v111_v14, %v563_v18  ;;  %v140_v31 = vrot.slane %v111_v14, %v565_v19  ;;  %v144_v32 = vrot.slane %v111_v14, %v567_v20  ;;  %p448_p4 = por %p447_p3, %p446_p2 }
  0x4f   :  { %v165_v34 = vrot.slane %v110_v22, %v553_v12  ;;  %v169_v35 = vrot.slane %v110_v22, %v555_v13  ;;  %v173_v36 = vrot.slane %v110_v22, %v557_v15  ;;  %v177_v37 = vrot.slane %v110_v22, %v559_v16 }
  0x50   :  { %v181_v38 = vrot.slane %v110_v22, %v561_v17  ;;  %v185_v39 = vrot.slane %v110_v22, %v563_v18  ;;  %v189_v40 = vrot.slane %v110_v22, %v565_v19  ;;  %v193_v41 = vrot.slane %v110_v22, %v567_v20  ;;  %p449_p5 = pnand %p448_p4, %p442_p1 }
  0x51   :  { %v216_v44 = vrot.slane %v211_v33, %v553_v12  ;;  %v220_v45 = vrot.slane %v211_v33, %v555_v13  ;;  %v224_v46 = vrot.slane %v211_v33, %v557_v15  ;;  %v228_v47 = vrot.slane %v211_v33, %v559_v16 }
  0x52   :  { %v232_v50 = vrot.slane %v211_v33, %v561_v17  ;;  %v236_v51 = vrot.slane %v211_v33, %v563_v18  ;;  %v240_v52 = vrot.slane %v211_v33, %v565_v19  ;;  %v244_v54 = vrot.slane %v211_v33, %v567_v20 }
  0x53   :  { %v275_v55 = vrot.slane %v591_v42, %v553_v12  ;;  %v279_v56 = vrot.slane %v591_v42, %v555_v13  ;;  %v283_v58 = vrot.slane %v591_v42, %v557_v15  ;;  %v287_v59 = vrot.slane %v591_v42, %v559_v16 }
  0x54   :  { %v291_v60 = vrot.slane %v591_v42, %v561_v17  ;;  %v295_v63 = vrot.slane %v591_v42, %v563_v18  ;;  %v299_v0 = vrot.slane %v591_v42, %v565_v19  ;;  %v303_v1 = vrot.slane %v591_v42, %v567_v20 }
  0xd7   :  { %v79_v43 = vpop.xlane.xlu0 %78 }
  0xd8   :  { %v82_v48 = vadd.f32 %v81_v21, %v79_v43  ;;  %v105_v49 = vpop.xlane.xlu1 %104 }
  0xd9   :  { %v108_v53 = vadd.f32 %v107_v29, %v105_v49 }
  0xda   :  { %v83_v57 = vmax.f32 %v82_v48, 0.0 }
  0xdb   :  { %v92_v61 = vpop.xlane.xlu0 %91  ;;  %v109_v62 = vmax.f32 %v108_v53, 0.0 }
  0xdc   :  { %v95_v2 = vadd.f32 %v94_v25, %v92_v61  ;;  %v153_v3 = vmul.f32 %v116_v23, %v83_v57  ;;  %v154_v4 = vmul.f32 %v120_v24, %v83_v57  ;;  %v155_v5 = vmul.f32 %v124_v26, %v83_v57 }
  0xdd   :  { %v156_v6 = vmul.f32 %v128_v27, %v83_v57  ;;  %v157_v7 = vmul.f32 %v132_v28, %v83_v57  ;;  %v158_v8 = vmul.f32 %v136_v30, %v83_v57  ;;  %v159_v9 = vmul.f32 %v140_v31, %v83_v57 }
  0xde   :  { %v96_v10 = vmax.f32 %v95_v2, 0.0  ;;  %v160_v11 = vmul.f32 %v144_v32, %v83_v57  ;;  %v202_v12 = vadd.f32 %v165_v34, %v153_v3  ;;  %v203_v13 = vadd.f32 %v169_v35, %v154_v4 }
  0xdf   :  { %v204_v14 = vadd.f32 %v173_v36, %v155_v5  ;;  %v205_v15 = vadd.f32 %v177_v37, %v156_v6  ;;  %v206_v16 = vadd.f32 %v181_v38, %v157_v7  ;;  %v207_v17 = vadd.f32 %v185_v39, %v158_v8 }
  0xe0   :  { %v208_v18 = vadd.f32 %v189_v40, %v159_v9  ;;  %v209_v19 = vadd.f32 %v193_v41, %v160_v11  ;;  %v253_v21 = vmul.f32 %v216_v44, %v96_v10  ;;  %v254_v20 = vmul.f32 %v220_v45, %v96_v10 }
  0xe1   :  { %v255_v22 = vmul.f32 %v224_v46, %v96_v10  ;;  %v256_v23 = vmul.f32 %v228_v47, %v96_v10  ;;  %v257_v24 = vmul.f32 %v232_v50, %v96_v10  ;;  %v258_v25 = vmul.f32 %v236_v51, %v96_v10 }
  0xe2   :  { %v259_v26 = vmul.f32 %v240_v52, %v96_v10  ;;  %v260_v27 = vmul.f32 %v244_v54, %v96_v10  ;;  %v261_v28 = vadd.f32 %v253_v21, %v202_v12  ;;  %v262_v29 = vadd.f32 %v254_v20, %v203_v13 }
  0xe3   :  { %v263_v30 = vadd.f32 %v255_v22, %v204_v14  ;;  %v264_v31 = vadd.f32 %v256_v23, %v205_v15  ;;  %v265_v32 = vadd.f32 %v257_v24, %v206_v16  ;;  %v266_v33 = vadd.f32 %v258_v25, %v207_v17 }
  0xe4   :  { %v267_v34 = vadd.f32 %v259_v26, %v208_v18  ;;  %v268_v35 = vadd.f32 %v260_v27, %v209_v19  ;;  %v312_v36 = vmul.f32 %v275_v55, %v109_v62  ;;  %v313_v37 = vmul.f32 %v279_v56, %v109_v62 }
  0xe5   :  { %v314_v38 = vmul.f32 %v283_v58, %v109_v62  ;;  %v315_v39 = vmul.f32 %v287_v59, %v109_v62  ;;  %v316_v40 = vmul.f32 %v291_v60, %v109_v62  ;;  %v317_v41 = vmul.f32 %v295_v63, %v109_v62 }
  0xe6   :  { %v318_v42 = vmul.f32 %v299_v0, %v109_v62  ;;  %v319_v43 = vmul.f32 %v303_v1, %v109_v62  ;;  %v320_v44 = vadd.f32 %v312_v36, %v261_v28  ;;  %v321_v45 = vadd.f32 %v313_v37, %v262_v29 }
  0xe7   :  { %v322_v46 = vadd.f32 %v314_v38, %v263_v30  ;;  %v323_v47 = vadd.f32 %v315_v39, %v264_v31  ;;  %v324_v48 = vadd.f32 %v316_v40, %v265_v32  ;;  %v325_v49 = vadd.f32 %v317_v41, %v266_v33 }
  0xe8   :  { %v326_v50 = vadd.f32 %v318_v42, %v267_v34  ;;  %v327_v51 = vadd.f32 %v319_v43, %v268_v35  ;;  %328 = vst [vmem:[#allocation10] sm:$0xff] %v320_v44  ;;  %329 = vst [vmem:[#allocation10 + $0x8] sm:$0xff] %v321_v45 }
  0xe9   :  { %330 = vst [vmem:[#allocation10 + $0x10] sm:$0xff] %v322_v46  ;;  %331 = vst [vmem:[#allocation10 + $0x18] sm:$0xff] %v323_v47 }
  0xea   :  { %332 = vst [vmem:[#allocation10 + $0x20] sm:$0xff] %v324_v48  ;;  %333 = vst [vmem:[#allocation10 + $0x28] sm:$0xff] %v325_v49 }
  0xeb   :  { %334 = vst [vmem:[#allocation10 + $0x30] sm:$0xff] %v326_v50  ;;  %335 = vst [vmem:[#allocation10 + $0x38] sm:$0xff] %v327_v51 }
  0xec   :  { %452 = shalt.err (!%p449_p5)
}
  0xed   :  { %s453_s14 = scalar_lea.hbm %s634_s5, 1024 }
  0xee   :  { %p454_p6 = scmp.ne.s32.totalorder %s634_s5, %s453_s14  ;;  %p457_p7 = scmp.lt.u32.totalorder %s453_s14, %s634_s5 }
  0xf0   :  { %p459_p8 = pnand %p457_p7, %p454_p6 }
  0xf2   :  { %462 = shalt.err (!%p459_p8)
}
  0xf3   :  { %345 = dma.vmem_to_hbm [thread:$0]  %s343_s10, 1024, %s634_s5, [#allocation4]  }
  0xf4   :  { %471 = dma.done.wait [#allocation4], 1024  }
  0xf5   :  { %472 = vsyncadd [#allocation4], 4294966272 }
  0xf6   :  { %349 = vsyncpa [#allocation3], 1 }
  0xf7   :  { %350 = vsyncpa [#allocation7], 1 }
  0xf8   :  { %351 = vsyncpa [#allocation4], 1 }
  0xf9   :  { %352 = vsyncpa [#allocation5], 1 }

</bundles_post_ra>
